<compile_context>
chip_gen: v7x
topology: tpu7x:2x2x1
jax: 0.10.0
libtpu: 0.0.40
codegen_flags: <defaults>
</compile_context>

<pallas_src>
import jax
import jax.numpy as jnp
from jax import lax
from jax.experimental import pallas as pl
from jax.experimental.pallas import tpu as pltpu


# Contract the last dimension of both operands (i.e. A @ B^T without a
# transpose op): dimension_numbers = ((lhs_contract, rhs_contract), (batch, batch))
_CONTRACT_LAST = (((1,), (1,)), ((), ()))


def _attn_math(xq, xk, xv, wq, wk, wv, bias):
    """Shared attention math on VMEM-resident tiles. `bias` is None or (S,S) f32."""
    # Linear projections: y = x @ W^T, W stored as (out, in).
    q = lax.dot_general(xq, wq, _CONTRACT_LAST, preferred_element_type=jnp.float32)
    k = lax.dot_general(xk, wk, _CONTRACT_LAST, preferred_element_type=jnp.float32)
    v = lax.dot_general(xv, wv, _CONTRACT_LAST, preferred_element_type=jnp.float32)

    # sims = q @ k^T (contract feature dim of both), then scale by 1/sqrt(d_model).
    sims = lax.dot_general(q, k, _CONTRACT_LAST, preferred_element_type=jnp.float32)
    inv_scale = 1.0 / (float(k.shape[1]) ** 0.5)          # static Python scalar
    scaled = sims * inv_scale

    if bias is not None:
        scaled = scaled + bias                             # single vadd

    # softmax over col_dim (axis=1); exact divide (approx reciprocal removed
    # because its ~2^-12 relative error tripped the correctness tolerance).
    m = jnp.max(scaled, axis=1, keepdims=True)
    e = jnp.exp(scaled - m)
    denom = jnp.sum(e, axis=1, keepdims=True)
    probs = e / denom

    # attention output: probs @ v (standard contraction, no transpose needed)
    return jnp.dot(probs, v, preferred_element_type=jnp.float32)


# ----------------------------- single problem ------------------------------

def _attention_kernel_nomask(xq_ref, xk_ref, xv_ref, wq_ref, wk_ref, wv_ref, out_ref):
    out_ref[...] = _attn_math(xq_ref[...], xk_ref[...], xv_ref[...],
                              wq_ref[...], wk_ref[...], wv_ref[...], None)


def _attention_kernel_masked(xq_ref, xk_ref, xv_ref, wq_ref, wk_ref, wv_ref,
                             bias_ref, out_ref):
    out_ref[...] = _attn_math(xq_ref[...], xk_ref[...], xv_ref[...],
                              wq_ref[...], wk_ref[...], wv_ref[...], bias_ref[...])


def attention_pallas(enc_q, enc_k, enc_v, w_q, w_k, w_v, mask=None):
    """enc_*: (S, D) f32; w_*: (D, D) f32 (out, in); mask: (S, S) bool or None."""
    S, D = enc_q.shape
    sd = pl.BlockSpec((S, D), lambda: (0, 0))
    dd = pl.BlockSpec((D, D), lambda: (0, 0))
    out_spec = pl.BlockSpec((S, D), lambda: (0, 0))
    out_shape = jax.ShapeDtypeStruct((S, D), jnp.float32)

    if mask is None:
        # No dummy mask DMA / compare+select on this path.
        return pl.pallas_call(
            _attention_kernel_nomask,
            out_shape=out_shape,
            in_specs=[sd, sd, sd, dd, dd, dd],
            out_specs=out_spec,
        )(enc_q, enc_k, enc_v, w_q, w_k, w_v)

    # Precompute the additive f32 bias once in the wrapper.
    bias = jnp.where(mask, jnp.float32(-1.0e9), jnp.float32(0.0))
    ss = pl.BlockSpec((S, S), lambda: (0, 0))
    return pl.pallas_call(
        _attention_kernel_masked,
        out_shape=out_shape,
        in_specs=[sd, sd, sd, dd, dd, dd, ss],
        out_specs=out_spec,
    )(enc_q, enc_k, enc_v, w_q, w_k, w_v, bias)


# -------------------- batched: many problems per pallas_call ----------------

def _attention_kernel_batched_nomask(xq_ref, xk_ref, xv_ref,
                                     wq_ref, wk_ref, wv_ref, out_ref):
    out_ref[0] = _attn_math(xq_ref[0], xk_ref[0], xv_ref[0],
                            wq_ref[...], wk_ref[...], wv_ref[...], None)


def _attention_kernel_batched_masked(xq_ref, xk_ref, xv_ref,
                                     wq_ref, wk_ref, wv_ref, bias_ref, out_ref):
    out_ref[0] = _attn_math(xq_ref[0], xk_ref[0], xv_ref[0],
                            wq_ref[...], wk_ref[...], wv_ref[...], bias_ref[...])


def attention_pallas_batched(enc_q, enc_k, enc_v, w_q, w_k, w_v, mask=None):
    """Batch of independent attention problems. enc_*: (B, S, D); shared weights/mask.

    One pallas_call with grid=(B,) amortizes launch/DMA overhead and the
    "parallel" axis lets Mosaic shard batch elements across TensorCores.
    """
    B, S, D = enc_q.shape
    enc_spec = pl.BlockSpec((1, S, D), lambda b: (b, 0, 0))
    w_spec = pl.BlockSpec((D, D), lambda b: (0, 0))
    out_spec = pl.BlockSpec((1, S, D), lambda b: (b, 0, 0))
    out_shape = jax.ShapeDtypeStruct((B, S, D), jnp.float32)
    cparams = pltpu.CompilerParams(dimension_semantics=("parallel",))

    if mask is None:
        return pl.pallas_call(
            _attention_kernel_batched_nomask,
            out_shape=out_shape,
            grid=(B,),
            in_specs=[enc_spec, enc_spec, enc_spec, w_spec, w_spec, w_spec],
            out_specs=out_spec,
            compiler_params=cparams,
        )(enc_q, enc_k, enc_v, w_q, w_k, w_v)

    bias = jnp.where(mask, jnp.float32(-1.0e9), jnp.float32(0.0))
    bias_spec = pl.BlockSpec((S, S), lambda b: (0, 0))
    return pl.pallas_call(
        _attention_kernel_batched_masked,
        out_shape=out_shape,
        grid=(B,),
        in_specs=[enc_spec, enc_spec, enc_spec, w_spec, w_spec, w_spec, bias_spec],
        out_specs=out_spec,
        compiler_params=cparams,
    )(enc_q, enc_k, enc_v, w_q, w_k, w_v, bias)


# ------------------------------- reference ----------------------------------

def attention_reference(enc_q, enc_k, enc_v, w_q, w_k, w_v, mask=None):
    # Precision.HIGHEST: true f32 oracle on TPU (default matmul precision on
    # TPU uses bf16 passes, which previously broke the comparison).
    hp = lax.Precision.HIGHEST
    q = jnp.matmul(enc_q, w_q.T, precision=hp)
    k = jnp.matmul(enc_k, w_k.T, precision=hp)
    v = jnp.matmul(enc_v, w_v.T, precision=hp)
    sims = jnp.matmul(q, k.T, precision=hp)
    scaled = sims / jnp.sqrt(jnp.float32(k.shape[1]))
    if mask is not None:
        scaled = jnp.where(mask, -1.0e9, scaled)
    probs = jax.nn.softmax(scaled, axis=1)
    return jnp.matmul(probs, v, precision=hp)


if __name__ == "__main__":
    SEQ = 8
    D_MODEL = 32
    BATCH = 4

    key = jax.random.PRNGKey(0)
    keys = jax.random.split(key, 9)

    enc_q = jax.random.normal(keys[0], (SEQ, D_MODEL), dtype=jnp.float32)
    enc_k = jax.random.normal(keys[1], (SEQ, D_MODEL), dtype=jnp.float32)
    enc_v = jax.random.normal(keys[2], (SEQ, D_MODEL), dtype=jnp.float32)

    # PyTorch Linear weight shape: (out_features, in_features)
    scale = 1.0 / (D_MODEL ** 0.5)
    w_q = jax.random.uniform(keys[3], (D_MODEL, D_MODEL), jnp.float32, -scale, scale)
    w_k = jax.random.uniform(keys[4], (D_MODEL, D_MODEL), jnp.float32, -scale, scale)
    w_v = jax.random.uniform(keys[5], (D_MODEL, D_MODEL), jnp.float32, -scale, scale)

    # Tolerance covers any residual MXU pass-precision difference between the
    # in-kernel dots and the HIGHEST-precision reference.
    TOL = dict(atol=5e-3, rtol=5e-3)

    # --- no-mask path (specialized kernel, no dummy mask DMA) ---
    out = jax.block_until_ready(attention_pallas(enc_q, enc_k, enc_v, w_q, w_k, w_v))
    ref = attention_reference(enc_q, enc_k, enc_v, w_q, w_k, w_v)
    assert jnp.allclose(out, ref, **TOL), "no-mask path mismatch"

    # --- masked (causal) path: additive -1e9 bias inside the kernel ---
    causal_mask = jnp.triu(jnp.ones((SEQ, SEQ), dtype=bool), k=1)
    out_m = jax.block_until_ready(
        attention_pallas(enc_q, enc_k, enc_v, w_q, w_k, w_v, causal_mask))
    ref_m = attention_reference(enc_q, enc_k, enc_v, w_q, w_k, w_v, causal_mask)
    assert jnp.allclose(out_m, ref_m, **TOL), "masked path mismatch"

    # --- batched grid path: many problems in one pallas_call ---
    bq = jax.random.normal(keys[6], (BATCH, SEQ, D_MODEL), dtype=jnp.float32)
    bk = jax.random.normal(keys[7], (BATCH, SEQ, D_MODEL), dtype=jnp.float32)
    bv = jax.random.normal(keys[8], (BATCH, SEQ, D_MODEL), dtype=jnp.float32)
    out_b = jax.block_until_ready(
        attention_pallas_batched(bq, bk, bv, w_q, w_k, w_v, causal_mask))
    ref_b = jax.vmap(
        lambda a, b, c: attention_reference(a, b, c, w_q, w_k, w_v, causal_mask)
    )(bq, bk, bv)
    assert jnp.allclose(out_b, ref_b, **TOL), "batched path mismatch"

    print("KERNEL_OK")
</pallas_src>

<mosaic_0001>
module attributes {stable_mosaic.version = 11 : i64} {
  func.func @_attention_kernel_nomask(%arg0: memref<8x32xf32, #tpu.memory_space<vmem>>, %arg1: memref<8x32xf32, #tpu.memory_space<vmem>>, %arg2: memref<8x32xf32, #tpu.memory_space<vmem>>, %arg3: memref<32x32xf32, #tpu.memory_space<vmem>>, %arg4: memref<32x32xf32, #tpu.memory_space<vmem>>, %arg5: memref<32x32xf32, #tpu.memory_space<vmem>>, %arg6: memref<8x32xf32, #tpu.memory_space<vmem>>) attributes {dimension_semantics = [], scalar_prefetch = 0 : i64, scratch_operands = 0 : i64, tpu.core_type = #tpu.core_type<tc>} {
    %c0 = arith.constant 0 : index
    %c0_0 = arith.constant 0 : index
    %0 = vector.load %arg0[%c0, %c0_0] : memref<8x32xf32, #tpu.memory_space<vmem>>, vector<8x32xf32>
    %c0_1 = arith.constant 0 : index
    %c0_2 = arith.constant 0 : index
    %1 = vector.load %arg1[%c0_1, %c0_2] : memref<8x32xf32, #tpu.memory_space<vmem>>, vector<8x32xf32>
    %c0_3 = arith.constant 0 : index
    %c0_4 = arith.constant 0 : index
    %2 = vector.load %arg2[%c0_3, %c0_4] : memref<8x32xf32, #tpu.memory_space<vmem>>, vector<8x32xf32>
    %c0_5 = arith.constant 0 : index
    %c0_6 = arith.constant 0 : index
    %3 = vector.load %arg3[%c0_5, %c0_6] : memref<32x32xf32, #tpu.memory_space<vmem>>, vector<32x32xf32>
    %c0_7 = arith.constant 0 : index
    %c0_8 = arith.constant 0 : index
    %4 = vector.load %arg4[%c0_7, %c0_8] : memref<32x32xf32, #tpu.memory_space<vmem>>, vector<32x32xf32>
    %c0_9 = arith.constant 0 : index
    %c0_10 = arith.constant 0 : index
    %5 = vector.load %arg5[%c0_9, %c0_10] : memref<32x32xf32, #tpu.memory_space<vmem>>, vector<32x32xf32>
    %cst = arith.constant dense<0.000000e+00> : vector<8x32xf32>
    %6 = tpu.matmul %0, %3, %cst {dimension_numbers = #tpu.dot_dimension_numbers<[1], [1], [0], [0], [0, 0, 1, 0], [], []>} : vector<8x32xf32>, vector<32x32xf32>, vector<8x32xf32> -> vector<8x32xf32>
    %cst_11 = arith.constant dense<0.000000e+00> : vector<8x32xf32>
    %7 = tpu.matmul %1, %4, %cst_11 {dimension_numbers = #tpu.dot_dimension_numbers<[1], [1], [0], [0], [0, 0, 1, 0], [], []>} : vector<8x32xf32>, vector<32x32xf32>, vector<8x32xf32> -> vector<8x32xf32>
    %cst_12 = arith.constant dense<0.000000e+00> : vector<8x32xf32>
    %8 = tpu.matmul %2, %5, %cst_12 {dimension_numbers = #tpu.dot_dimension_numbers<[1], [1], [0], [0], [0, 0, 1, 0], [], []>} : vector<8x32xf32>, vector<32x32xf32>, vector<8x32xf32> -> vector<8x32xf32>
    %cst_13 = arith.constant dense<0.000000e+00> : vector<8x8xf32>
    %9 = tpu.matmul %6, %7, %cst_13 {dimension_numbers = #tpu.dot_dimension_numbers<[1], [1], [0], [0], [0, 0, 1, 0], [], []>} : vector<8x32xf32>, vector<8x32xf32>, vector<8x8xf32> -> vector<8x8xf32>
    %cst_14 = arith.constant 0.176776692 : f32
    %10 = vector.broadcast %cst_14 : f32 to vector<8x8xf32>
    %11 = arith.mulf %9, %10 : vector<8x8xf32>
    %cst_15 = arith.constant dense<0xFF800000> : vector<8xf32>
    %12 = vector.multi_reduction <maximumf>, %11, %cst_15 [1] : vector<8x8xf32> to vector<8xf32>
    %13 = vector.shape_cast %12 : vector<8xf32> to vector<8x1xf32>
    %14 = vector.broadcast %13 : vector<8x1xf32> to vector<8x8xf32>
    %15 = arith.subf %11, %14 : vector<8x8xf32>
    %16 = math.exp %15 : vector<8x8xf32>
    %cst_16 = arith.constant dense<0.000000e+00> : vector<8xf32>
    %17 = vector.multi_reduction <add>, %16, %cst_16 [1] : vector<8x8xf32> to vector<8xf32>
    %18 = vector.shape_cast %17 : vector<8xf32> to vector<8x1xf32>
    %19 = vector.broadcast %18 : vector<8x1xf32> to vector<8x8xf32>
    %20 = arith.divf %16, %19 : vector<8x8xf32>
    %cst_17 = arith.constant dense<0.000000e+00> : vector<8x32xf32>
    %21 = tpu.matmul %20, %8, %cst_17 {dimension_numbers = #tpu.dot_dimension_numbers<[1], [0], [0], [1], [0, 0, 1, 1], [], []>} : vector<8x8xf32>, vector<8x32xf32>, vector<8x32xf32> -> vector<8x32xf32>
    %c0_18 = arith.constant 0 : index
    %c0_19 = arith.constant 0 : index
    %22 = vector.load %arg6[%c0_18, %c0_19] : memref<8x32xf32, #tpu.memory_space<vmem>>, vector<8x32xf32>
    tpu.vector_store %arg6[%c0_18, %c0_19], %21 {strides = array<i32>} : memref<8x32xf32, #tpu.memory_space<vmem>>, vector<8x32xf32>,
    return
  }
}

</mosaic_0001>

<bundles_post_ra>
// kernel: tpu_custom_call.1
= control target key start
LH: loop header
LB: loop body
LE: loop exit
PB: predicated region body
PF: predicated region fallthrough
CT: control target
= control target key end

     0   :  { %11 = vsyncpa [#allocation3], 0  ;;  %s1022_s0 = inlined_call_operand.hbm [shape: f32[8,32], index: 0, kind: input, shape index: {}]   ;;  %s1023_s1 = inlined_call_operand.hbm [shape: f32[8,32], index: 1, kind: input, shape index: {}]   ;;  %s1024_s2 = inlined_call_operand.hbm [shape: f32[8,32], index: 2, kind: input, shape index: {}]   ;;  %s1025_s3 = inlined_call_operand.hbm [shape: f32[32,32], index: 3, kind: input, shape index: {}]   ;;  %s1026_s4 = inlined_call_operand.hbm [shape: f32[32,32], index: 4, kind: input, shape index: {}]   ;;  %s1027_s5 = inlined_call_operand.hbm [shape: f32[32,32], index: 5, kind: input, shape index: {}]   ;;  %s1028_s6 = inlined_call_operand.hbm [shape: f32[8,32], index: 6, kind: output, shape index: {}]  }
   0x1   :  { %12 = vsyncpa [#allocation6], 0 }
   0x2   :  { %13 = vsyncpa [#allocation9], 0 }
   0x3   :  { %14 = vsyncpa [#allocation12], 0 }
   0x4   :  { %15 = vsyncpa [#allocation4], 0  ;;  %s836_s21 = smov [#allocation5]   ;;  %s837_s23 = smov [#allocation8]  }
   0x5   :  { %s32_s22 = sshll.u32 %s836_s21, 4  ;;  %s51_s24 = sshll.u32 %s837_s23, 4  ;;  %s33_s22 = int_to_ptr.vmem [resolvable:$true] %s32_s22  ;;  %s883_s24 = int_to_ptr.vmem [resolvable:$true] %s51_s24 }
   0x6   :  { %s672_s27 = scalar_lea.hbm %s1023_s1, 128 }
   0x7   :  { %p673_p0 = scmp.ne.s32.totalorder %s1023_s1, %s672_s27  ;;  %p676_p1 = scmp.lt.u32.totalorder %s672_s27, %s1023_s1 }
   0x9   :  { %p678_p2 = pnand %p676_p1, %p673_p0 }
   0xb   :  { %681 = shalt.err (!%p678_p2)
}
   0xc   :  { %s682_s8 = scalar_lea.vmem %s33_s22, 128  ;;  %p687_p4 = scmp.lt.s32.totalorder %s33_s22, %s33_s22 }
   0xd   :  { %p683_p3 = scmp.ne.s32.totalorder %s33_s22, %s682_s8  ;;  %p688_p5 = scmp.lt.s32.totalorder %s682_s8, %s682_s8 }
   0xf   :  { %p689_p6 = por %p688_p5, %p687_p4 }
  0x11   :  { %p690_p7 = pnand %p689_p6, %p683_p3 }
  0x13   :  { %693 = shalt.err (!%p690_p7)
}
  0x14   :  { %35 = dma.hbm_to_vmem [thread:$0]  %s1023_s1, 128, %s33_s22, [#allocation6]  }
  0x15   :  { %s694_s13 = scalar_lea.hbm %s1025_s3, 512 }
  0x16   :  { %p695_p8 = scmp.ne.s32.totalorder %s1025_s3, %s694_s13  ;;  %p698_p9 = scmp.lt.u32.totalorder %s694_s13, %s1025_s3 }
  0x18   :  { %p700_p10 = pnand %p698_p9, %p695_p8 }
  0x1a   :  { %703 = shalt.err (!%p700_p10)
}
  0x1b   :  { %s704_s18 = scalar_lea.vmem %s883_s24, 512  ;;  %p709_p12 = scmp.lt.s32.totalorder %s883_s24, %s883_s24 }
  0x1c   :  { %p705_p11 = scmp.ne.s32.totalorder %s883_s24, %s704_s18  ;;  %p710_p13 = scmp.lt.s32.totalorder %s704_s18, %s704_s18 }
  0x1e   :  { %p711_p0 = por %p710_p13, %p709_p12 }
  0x20   :  { %p712_p1 = pnand %p711_p0, %p705_p11 }
  0x22   :  { %715 = shalt.err (!%p712_p1)
}
  0x23   :  { %s838_s1 = smov 128   ;;  %s839_s19 = smov 8  }
  0x24   :  { %57 = dma.hbm_to_vmem [thread:$0]  %s1025_s3, 512, %s883_s24, [#allocation9], %s838_s1, %s838_s1, %s839_s19  }
  0x25   :  { %s840_s22 = smov [#allocation2]   ;;  %s841_s25 = smov [#allocation7]  }
  0x26   :  { %s22_s23 = sshll.u32 %s840_s22, 4  ;;  %s42_s26 = sshll.u32 %s841_s25, 4  ;;  %s23_s23 = int_to_ptr.vmem [resolvable:$true] %s22_s23  ;;  %s43_s26 = int_to_ptr.vmem [resolvable:$true] %s42_s26 }
  0x27   :  { %s716_s29 = scalar_lea.hbm %s1022_s0, 128 }
  0x28   :  { %p717_p2 = scmp.ne.s32.totalorder %s1022_s0, %s716_s29  ;;  %p720_p3 = scmp.lt.u32.totalorder %s716_s29, %s1022_s0 }
  0x2a   :  { %p722_p4 = pnand %p720_p3, %p717_p2 }
  0x2c   :  { %725 = shalt.err (!%p722_p4)
}
  0x2d   :  { %s726_s3 = scalar_lea.vmem %s23_s23, 128  ;;  %p731_p6 = scmp.lt.s32.totalorder %s23_s23, %s23_s23 }
  0x2e   :  { %p727_p5 = scmp.ne.s32.totalorder %s23_s23, %s726_s3  ;;  %p732_p7 = scmp.lt.s32.totalorder %s726_s3, %s726_s3 }
  0x30   :  { %p733_p8 = por %p732_p7, %p731_p6 }
  0x32   :  { %p734_p9 = pnand %p733_p8, %p727_p5 }
  0x34   :  { %737 = shalt.err (!%p734_p9)
}
  0x35   :  { %25 = dma.hbm_to_vmem [thread:$0]  %s1022_s0, 128, %s23_s23, [#allocation3]  }
  0x36   :  { %s738_s13 = scalar_lea.hbm %s1024_s2, 128 }
  0x37   :  { %p739_p10 = scmp.ne.s32.totalorder %s1024_s2, %s738_s13  ;;  %p742_p11 = scmp.lt.u32.totalorder %s738_s13, %s1024_s2 }
  0x39   :  { %p744_p12 = pnand %p742_p11, %p739_p10 }
  0x3b   :  { %747 = shalt.err (!%p744_p12)
}
  0x3c   :  { %s748_s18 = scalar_lea.vmem %s43_s26, 128  ;;  %p753_p0 = scmp.lt.s32.totalorder %s43_s26, %s43_s26 }
  0x3d   :  { %p749_p13 = scmp.ne.s32.totalorder %s43_s26, %s748_s18  ;;  %p754_p1 = scmp.lt.s32.totalorder %s748_s18, %s748_s18 }
  0x3f   :  { %p755_p2 = por %p754_p1, %p753_p0 }
  0x41   :  { %p756_p3 = pnand %p755_p2, %p749_p13 }
  0x43   :  { %759 = shalt.err (!%p756_p3)
}
  0x44   :  { %45 = dma.hbm_to_vmem [thread:$0]  %s1024_s2, 128, %s43_s26, [#allocation6]  }
  0x45   :  { %s842_s21 = smov [#allocation10]   ;;  %s843_s23 = smov [#allocation11]  }
  0x46   :  { %s63_s22 = sshll.u32 %s842_s21, 4  ;;  %s75_s25 = sshll.u32 %s843_s23, 4  ;;  %s64_s22 = int_to_ptr.vmem [resolvable:$true] %s63_s22  ;;  %s941_s25 = int_to_ptr.vmem [resolvable:$true] %s75_s25 }
  0x47   :  { %s760_s29 = scalar_lea.hbm %s1026_s4, 512 }
  0x48   :  { %p761_p4 = scmp.ne.s32.totalorder %s1026_s4, %s760_s29  ;;  %p764_p5 = scmp.lt.u32.totalorder %s760_s29, %s1026_s4 }
  0x4a   :  { %p766_p6 = pnand %p764_p5, %p761_p4 }
  0x4c   :  { %769 = shalt.err (!%p766_p6)
}
  0x4d   :  { %s770_s2 = scalar_lea.vmem %s64_s22, 512  ;;  %p775_p8 = scmp.lt.s32.totalorder %s64_s22, %s64_s22 }
  0x4e   :  { %p771_p7 = scmp.ne.s32.totalorder %s64_s22, %s770_s2  ;;  %p776_p9 = scmp.lt.s32.totalorder %s770_s2, %s770_s2 }
  0x50   :  { %p777_p10 = por %p776_p9, %p775_p8 }
  0x52   :  { %p778_p11 = pnand %p777_p10, %p771_p7 }
  0x54   :  { %781 = shalt.err (!%p778_p11)
}
  0x55   :  { %69 = dma.hbm_to_vmem [thread:$0]  %s1026_s4, 512, %s64_s22, [#allocation9], %s838_s1, %s838_s1, %s839_s19  }
  0x56   :  { %s782_s11 = scalar_lea.hbm %s1027_s5, 512 }
  0x57   :  { %p783_p12 = scmp.ne.s32.totalorder %s1027_s5, %s782_s11  ;;  %p786_p13 = scmp.lt.u32.totalorder %s782_s11, %s1027_s5 }
  0x59   :  { %p788_p0 = pnand %p786_p13, %p783_p12 }
  0x5b   :  { %791 = shalt.err (!%p788_p0)
}
  0x5c   :  { %s792_s16 = scalar_lea.vmem %s941_s25, 512  ;;  %p797_p2 = scmp.lt.s32.totalorder %s941_s25, %s941_s25 }
  0x5d   :  { %p793_p1 = scmp.ne.s32.totalorder %s941_s25, %s792_s16  ;;  %p798_p3 = scmp.lt.s32.totalorder %s792_s16, %s792_s16 }
  0x5f   :  { %p799_p4 = por %p798_p3, %p797_p2 }
  0x61   :  { %p800_p5 = pnand %p799_p4, %p793_p1 }
  0x63   :  { %803 = shalt.err (!%p800_p5)
}
  0x64   :  { %81 = dma.hbm_to_vmem [thread:$0]  %s1027_s5, 512, %s941_s25, [#allocation12], %s838_s1, %s838_s1, %s839_s19  }
  0x65   :  { %826 = dma.done.wait [#allocation3], 128  }
  0x66   :  { %827 = vsyncadd [#allocation3], 4294967168 }
  0x67   :  { %828 = dma.done.wait [#allocation6], 256  }
  0x68   :  { %829 = vsyncadd [#allocation6], 4294967040 }
  0x69   :  { %830 = dma.done.wait [#allocation9], 1024  }
  0x6a   :  { %831 = vsyncadd [#allocation9], 4294966272 }
  0x6b   :  { %832 = dma.done.wait [#allocation12], 512  }
  0x6c   :  { %833 = vsyncadd [#allocation12], 4294966784  ;;  %v844_v0 = vmov 0.0|0.0   ;;  %vm845_vm0 = vmmov 0   ;;  %v846_v1 = vmov 0.0   ;;  %vm115_vm1 = vcmask 261120  }
  0x6d   :  { %640 = vmatprep.subr.bf16.mxu1 %v844_v0  ;;  %632 = vmatprep.subr.bf16.mxu0 %v844_v0  ;;  %vm982_vm2 = vmpackc.low %vm115_vm1, %vm115_vm1  ;;  %v107_v3 = vld [vmem:[#allocation10] sm:$0xff]  ;;  %v108_v4 = vld [vmem:[#allocation10 + $0x8] sm:$0xff]  ;;  %vm448_vm3 = vcmask 64512   ;;  %s847_s5 = smov [#allocation13]  }
  0x6e   :  { %608 = vmatprep.mubr.msk.f32.mxu1 %vm845_vm0, %v846_v1  ;;  %597 = vmatprep.mubr.msk.f32.mxu0 %vm845_vm0, %v846_v1  ;;  %v103_v5 = vld [vmem:[#allocation8] sm:$0xff]  ;;  %v641_v6 = vpack.c.bf16 %v108_v4, %v107_v3  ;;  %v104_v7 = vld [vmem:[#allocation8 + $0x8] sm:$0xff]  ;;  %v109_v9 = vld [vmem:[#allocation10 + $0x10] sm:$0xff]  ;;  %s540_s1 = sshll.u32 %s847_s5, 4  ;;  %s541_s1 = int_to_ptr.vmem [resolvable:$true] %s540_s1 }
  0x6f   :  { %v633_v8 = vpack.c.bf16 %v104_v7, %v103_v5  ;;  %v110_v10 = vld [vmem:[#allocation10 + $0x18] sm:$0xff]  ;;  %v105_v11 = vld [vmem:[#allocation8 + $0x10] sm:$0xff]  ;;  %v100_v16 = vld [vmem:[#allocation2] sm:$0xff]  ;;  %s804_s19 = scalar_lea.vmem %s541_s1, 128  ;;  %p809_p7 = scmp.lt.s32.totalorder %s541_s1, %s541_s1 }
  0x70   :  { %643 = vmatpush3.bf16.xpose.msk.msra.mxu1 %vm982_vm2, %v641_v6  ;;  %v106_v12 = vld [vmem:[#allocation8 + $0x18] sm:$0xff]  ;;  %v645_v13 = vpack.c.bf16 %v110_v10, %v109_v9  ;;  %v101_v15 = vld [vmem:[#allocation5] sm:$0xff]  ;;  %v111_v21 = vld [vmem:[#allocation11] sm:$0xff]  ;;  %p805_p6 = scmp.ne.s32.totalorder %s541_s1, %s804_s19  ;;  %p810_p8 = scmp.lt.s32.totalorder %s804_s19, %s804_s19 }
  0x71   :  { %635 = vmatpush3.bf16.xpose.msk.msra.mxu0 %vm982_vm2, %v633_v8  ;;  %644 = vmatprep.subr.bf16.mxu1 %v844_v0  ;;  %v637_v14 = vpack.c.bf16 %v106_v12, %v105_v11  ;;  %v112_v22 = vld [vmem:[#allocation11 + $0x8] sm:$0xff]  ;;  %v113_v24 = vld [vmem:[#allocation11 + $0x10] sm:$0xff]  ;;  %v114_v25 = vld [vmem:[#allocation11 + $0x18] sm:$0xff] }
  0x72   :  { %636 = vmatprep.subr.bf16.mxu0 %v844_v0  ;;  %v649_v23 = vpack.c.bf16 %v112_v22, %v111_v21  ;;  %v653_v26 = vpack.c.bf16 %v114_v25, %v113_v24  ;;  %v102_v27 = vld [vmem:[#allocation7] sm:$0xff]  ;;  %p811_p9 = por %p810_p8, %p809_p7 }
  0x74   :  { %p812_p10 = pnand %p811_p9, %p805_p6 }
  0x78   :  { %647 = vmatpush3.bf16.xpose.msk.msra.mxu1 %vm982_vm2, %v645_v13 }
  0x79   :  { %639 = vmatpush3.bf16.xpose.msk.msra.mxu0 %vm982_vm2, %v637_v14  ;;  %622 = vmatprep.subr.mxu1 %v846_v1 }
  0x7a   :  { %648 = vmatprep.subr.bf16.mxu0 %v844_v0 }
  0x7f   :  { %609 = vmatmul.mubr.msk.f32.vlgmr.msra.gmra.mrb[0].mxu1 %vm115_vm1, %v101_v15 }
  0x80   :  { %598 = vmatmul.mubr.msk.f32.vlgmr.msra.gmra.mrb[0].mxu0 %vm115_vm1, %v100_v16  ;;  %624 = vmatprep.mubr.msk.f32.mxu1 %vm845_vm0, %v846_v1 }
  0x81   :  { %619 = vmatprep.mubr.msk.f32.mxu0 %vm845_vm0, %v846_v1  ;;  %651 = vmatpush3.bf16.xpose.msk.msra.mxu0 %vm982_vm2, %v649_v23 }
  0x82   :  { %652 = vmatprep.subr.bf16.mxu0 %v844_v0 }
  0x89   :  { %655 = vmatpush3.bf16.xpose.msk.msra.mxu0 %vm982_vm2, %v653_v26 }
  0x90   :  { %620 = vmatmul.mubr.msk.f32.vlgmr.msra.gmra.mrb[2].mxu0 %vm115_vm1, %v102_v27 }
 0x152   :  { %v282_v17 = vpop.f32.mrb[0].mxu1 }
 0x153   :  { %v610_v18 = vpop.f32.mrb[1].mxu1  ;;  %623 = vmatpush3.xpose.msk.msra.mxu1 %vm115_vm1, %v282_v17  ;;  %v197_v19 = vpop.f32.mrb[0].mxu0 }
 0x154   :  { %v599_v20 = vpop.f32.mrb[1].mxu0  ;;  %627 = vmatprep.subr.mxu1 %v846_v1 }
 0x156   :  { %625 = vmatmul.mubr.msk.f32.vlgmr.msra.gmra.mrb[2].mxu1 %vm115_vm1, %v197_v19 }
 0x157   :  { %629 = vmatprep.mubr.msk.f32.mxu1 %vm845_vm0, %v846_v1 }
 0x163   :  { %v367_v37 = vpop.f32.mrb[2].mxu0 }
 0x164   :  { %v621_v38 = vpop.f32.mrb[3].mxu0  ;;  %628 = vmatpush3.msra.mxu1 %v367_v37 }
 0x229   :  { %v443_v28 = vpop.f32.mrb[2].mxu1 }
 0x22a   :  { %v447_v29 = vmul.f32 0.17677669, %v443_v28  ;;  %v626_v30 = vpop.f32.mrb[3].mxu1 }
 0x22c   :  { %v449_v31 = vsel %vm448_vm3, %v447_v29, -inf }
 0x22d   :  { %450 = vmax.xlane.f32.xlu0 %v449_v31 }
 0x2ba   :  { %v451_v32 = vpop.xlane.xlu0 %450 }
 0x2bb   :  { %v452_v33 = vsub.f32 %v447_v29, %v451_v32 }
 0x2bd   :  { %v453_v34 = vmul.f32 1.442695, %v452_v33 }
 0x2bf   :  { %668 = vpow2.f32 %v453_v34 }
 0x2c9   :  { %v669_v35 = vpop.eup %668 }
 0x2ca   :  { %v455_v36 = vsel %vm448_vm3, %v669_v35, 0.0 }
 0x2cb   :  { %456 = vadd.xlane.f32.xlu0 %v455_v36 }
 0x358   :  { %v457_v39 = vpop.xlane.xlu0 %456 }
 0x359   :  { %670 = vrcp.f32 %v457_v39 }
 0x363   :  { %v671_v40 = vpop.eup %670 }
 0x364   :  { %v459_v41 = vmul.f32 %v671_v40, %v669_v35 }
 0x366   :  { %630 = vmatmul.mubr.msk.f32.vlgmr.msra.gmra.mrb[4].mxu1 %vm448_vm3, %v459_v41 }
 0x439   :  { %v529_v42 = vpop.f32.mrb[4].mxu1 }
 0x43a   :  { %533 = vst.msk [vmem:[#allocation13] sm:$0xff] %vm115_vm1, %v529_v42  ;;  %v631_v43 = vpop.f32.mrb[5].mxu1 }
 0x43b   :  { %815 = shalt.err (!%p812_p10)
}
 0x43c   :  { %s816_s20 = scalar_lea.hbm %s1028_s6, 128 }
 0x43d   :  { %p817_p11 = scmp.ne.s32.totalorder %s1028_s6, %s816_s20  ;;  %p820_p12 = scmp.lt.u32.totalorder %s816_s20, %s1028_s6 }
 0x43f   :  { %p822_p13 = pnand %p820_p12, %p817_p11 }
 0x441   :  { %825 = shalt.err (!%p822_p13)
}
 0x442   :  { %543 = dma.vmem_to_hbm [thread:$0]  %s541_s1, 128, %s1028_s6, [#allocation4]  }
 0x443   :  { %834 = dma.done.wait [#allocation4], 128  }
 0x444   :  { %835 = vsyncadd [#allocation4], 4294967168 }
 0x445   :  { %547 = vsyncpa [#allocation3], 1 }
 0x446   :  { %548 = vsyncpa [#allocation6], 1 }
 0x447   :  { %549 = vsyncpa [#allocation9], 1 }
 0x448   :  { %550 = vsyncpa [#allocation12], 1 }
 0x449   :  { %551 = vsyncpa [#allocation4], 1 }

</bundles_post_ra>
